<compile_context>
chip_gen: v7x
topology: tpu7x:2x2x1
jax: 0.10.0
libtpu: 0.0.40
codegen_flags: <defaults>
</compile_context>

<pallas_src>
import functools
import math

import jax
import jax.numpy as jnp
from jax.experimental import pallas as pl
from jax.experimental.pallas import tpu as pltpu

LANE_WIDTH = 1024     # lane-dense last dim (multiple of 128)
ERR_ROWS = 8          # per-block error-partial tile is (8, 128)
MAX_BLOCK_ROWS = 512  # 512 x 1024 f32 = 2 MiB per input block


def _pact_log_quant_kernel(alpha_ref, x_ref, q_ref, err_ref, *,
                           ln_base, inv_ln_base, neg_ts):
    """Elementwise log-quantization; per-block partial |c_x - q_y| sum output."""
    alpha = alpha_ref[0, 0]
    inv_alpha = 1.0 / alpha            # one scalar reciprocal per grid step

    x = x_ref[...].astype(jnp.float32)
    c_x = jnp.clip(x, 0.0, alpha)
    normed = c_x * inv_alpha
    # log(0) = -inf is produced but discarded by the where (matches torch.where).
    log_value = jnp.where(normed == 0.0, neg_ts, jnp.log(normed) * inv_ln_base)
    r = jnp.round(log_value)           # round-half-to-even, like torch.round
    pow_r = jnp.exp(r * ln_base)       # base ** r without a pow lowering
    q_y = jnp.where(r > neg_ts, pow_r, 0.0) * alpha

    q_ref[...] = q_y.astype(q_ref.dtype)

    # Per-block partial error sum, written sparsely into a lane-dense (8,128) block
    # so the grid axis can stay "parallel" (no cross-step accumulator / SMEM carry).
    partial = jnp.sum(jnp.abs(c_x - q_y))
    sub = jax.lax.broadcasted_iota(jnp.int32, err_ref.shape, 0)
    lane = jax.lax.broadcasted_iota(jnp.int32, err_ref.shape, 1)
    err_ref[...] = jnp.where((sub == 0) & (lane == 0), partial, 0.0)


def _pick_rows_per_block(total, lane_width, min_rows):
    """Largest block-row count (power of two in [min_rows, MAX_BLOCK_ROWS]) with
    zero padding if possible, else with padding overhead <= total/8, else smallest."""
    candidates = [r for r in (512, 256, 128, 64, 32, 16, 8)
                  if min_rows <= r <= MAX_BLOCK_ROWS]
    for br in candidates:
        if total % (br * lane_width) == 0:
            return br
    for br in candidates:
        pad = (-total) % (br * lane_width)
        if pad * 8 <= total:
            return br
    return candidates[-1]


def pact_with_log_quantize(x, alpha=5.0, base=2.0, time_step=6):
    """Returns (q_y with x's shape/dtype, err of shape (1,))."""
    orig_shape = x.shape
    orig_dtype = x.dtype
    total = int(x.size)

    # Keep HBM traffic in bf16 when the input is bf16; otherwise f32 I/O.
    io_dtype = jnp.bfloat16 if orig_dtype == jnp.bfloat16 else jnp.float32
    min_rows = 16 if io_dtype == jnp.bfloat16 else 8

    lw = LANE_WIDTH
    br = _pick_rows_per_block(total, lw, min_rows)
    chunk = br * lw

    xf = jnp.ravel(x).astype(io_dtype)
    pad = (-total) % chunk
    if pad:  # zero padding is semantically inert here (quant(0) == 0, error 0)
        xf = jnp.pad(xf, (0, pad))
    rows = (total + pad) // lw
    num_blocks = rows // br
    x2 = xf.reshape(rows, lw)

    alpha_a = jnp.full((1, 1), alpha, jnp.float32)

    ln_base = float(math.log(base))
    kernel = functools.partial(
        _pact_log_quant_kernel,
        ln_base=ln_base,
        inv_ln_base=1.0 / ln_base,
        neg_ts=-float(time_step),
    )

    n = rows * lw
    cost = pl.CostEstimate(
        flops=10 * n,
        transcendentals=2 * n,
        bytes_accessed=2 * n * int(x2.dtype.itemsize),
    )

    q2, err_part = pl.pallas_call(
        kernel,
        out_shape=(
            jax.ShapeDtypeStruct((rows, lw), io_dtype),
            jax.ShapeDtypeStruct((num_blocks * ERR_ROWS, 128), jnp.float32),
        ),
        grid=(num_blocks,),
        in_specs=[
            pl.BlockSpec(memory_space=pltpu.MemorySpace.SMEM),   # alpha scalar
            pl.BlockSpec((br, lw), lambda i: (i, 0)),            # x tile
        ],
        out_specs=(
            pl.BlockSpec((br, lw), lambda i: (i, 0)),            # q tile
            pl.BlockSpec((ERR_ROWS, 128), lambda i: (i, 0)),     # err partial tile
        ),
        compiler_params=pltpu.CompilerParams(
            dimension_semantics=("parallel",)),
        cost_estimate=cost,
    )(alpha_a, x2)

    err = jnp.sum(err_part, dtype=jnp.float32).reshape(1)
    if pad:
        q = q2.reshape(-1)[:total].reshape(orig_shape)
    else:
        q = q2.reshape(orig_shape)
    return q.astype(orig_dtype), err


def _reference(x, alpha=5.0, base=2.0, time_step=6):
    x = x.astype(jnp.float32)
    c_x = jnp.clip(x, 0.0, alpha)
    normed = c_x / alpha
    logv = jnp.where(normed == 0.0, -float(time_step),
                     jnp.log(normed) / jnp.log(base))
    r = jnp.round(logv)
    q_y = jnp.where(r > -float(time_step), base ** r, 0.0) * alpha
    err = jnp.sum(jnp.abs(c_x - q_y)).reshape(-1)
    return q_y, err


if __name__ == "__main__":
    key = jax.random.PRNGKey(0)

    # NCHW input like a conv activation map (exercises the padded path).
    x = jax.random.normal(key, (2, 4, 16, 16), dtype=jnp.float32) * 3.0
    q, err = pact_with_log_quantize(x, alpha=5.0, base=2.0, time_step=6)
    jax.block_until_ready((q, err))
    q_ref, err_ref = _reference(x, alpha=5.0, base=2.0, time_step=6)
    assert q.shape == x.shape and err.shape == (1,)
    assert jnp.allclose(q, q_ref, atol=1e-5, rtol=1e-5)
    assert jnp.allclose(err, err_ref, rtol=1e-3, atol=1e-2)

    # Second shape that divides the block size exactly (no pad / no slice path).
    key2 = jax.random.PRNGKey(1)
    x2 = jax.random.normal(key2, (2, 8, 32, 32), dtype=jnp.float32) * 3.0
    q2_, err2 = pact_with_log_quantize(x2, alpha=5.0, base=2.0, time_step=6)
    jax.block_until_ready((q2_, err2))
    q2_ref, err2_ref = _reference(x2, alpha=5.0, base=2.0, time_step=6)
    assert q2_.shape == x2.shape and err2.shape == (1,)
    assert jnp.allclose(q2_, q2_ref, atol=1e-5, rtol=1e-5)
    assert jnp.allclose(err2, err2_ref, rtol=1e-3, atol=1e-2)

    print("KERNEL_OK")
</pallas_src>

<mosaic_0001>
module attributes {stable_mosaic.version = 11 : i64} {
  func.func @_pact_log_quant_kernel(%arg0: i32, %arg1: memref<1x1xf32, #tpu.memory_space<smem>>, %arg2: memref<8x1024xf32, #tpu.memory_space<vmem>>, %arg3: memref<8x1024xf32, #tpu.memory_space<vmem>>, %arg4: memref<8x128xf32, #tpu.memory_space<vmem>>) attributes {dimension_semantics = [#tpu.dimension_semantics<parallel>], iteration_bounds = array<i64: 1>, scalar_prefetch = 0 : i64, scratch_operands = 0 : i64, tpu.core_type = #tpu.core_type<tc>, window_params = [{transform_indices = @transform_0, window_bounds = array<i64: 1, 1>}, {transform_indices = @transform_1, window_bounds = array<i64: 8, 1024>}, {transform_indices = @transform_2, window_bounds = array<i64: 8, 1024>}, {transform_indices = @transform_3, window_bounds = array<i64: 8, 128>}]} {
    %c0 = arith.constant 0 : index
    %c0_0 = arith.constant 0 : index
    %0 = memref.load %arg1[%c0, %c0_0] : memref<1x1xf32, #tpu.memory_space<smem>>
    %cst = arith.constant 1.000000e+00 : f32
    %1 = arith.divf %cst, %0 : f32
    %c0_1 = arith.constant 0 : index
    %c0_2 = arith.constant 0 : index
    %2 = vector.load %arg2[%c0_1, %c0_2] : memref<8x1024xf32, #tpu.memory_space<vmem>>, vector<8x1024xf32>
    %cst_3 = arith.constant 0.000000e+00 : f32
    %3 = vector.broadcast %cst_3 : f32 to vector<8x1024xf32>
    %4 = arith.maximumf %3, %2 : vector<8x1024xf32>
    %5 = vector.broadcast %0 : f32 to vector<8x1024xf32>
    %6 = arith.minimumf %5, %4 : vector<8x1024xf32>
    %7 = vector.broadcast %1 : f32 to vector<8x1024xf32>
    %8 = arith.mulf %6, %7 : vector<8x1024xf32>
    %cst_4 = arith.constant 0.000000e+00 : f32
    %9 = vector.broadcast %cst_4 : f32 to vector<8x1024xf32>
    %10 = arith.cmpf oeq, %8, %9 : vector<8x1024xf32>
    %11 = math.log %8 : vector<8x1024xf32>
    %cst_5 = arith.constant 1.44269502 : f32
    %12 = vector.broadcast %cst_5 : f32 to vector<8x1024xf32>
    %13 = arith.mulf %11, %12 : vector<8x1024xf32>
    %cst_6 = arith.constant -6.000000e+00 : f32
    %14 = vector.broadcast %cst_6 : f32 to vector<8x1024xf32>
    %15 = arith.select %10, %14, %13 : vector<8x1024xi1>, vector<8x1024xf32>
    %16 = math.roundeven %15 : vector<8x1024xf32>
    %cst_7 = arith.constant 0.693147182 : f32
    %17 = vector.broadcast %cst_7 : f32 to vector<8x1024xf32>
    %18 = arith.mulf %16, %17 : vector<8x1024xf32>
    %19 = math.exp %18 : vector<8x1024xf32>
    %cst_8 = arith.constant -6.000000e+00 : f32
    %20 = vector.broadcast %cst_8 : f32 to vector<8x1024xf32>
    %21 = arith.cmpf ogt, %16, %20 : vector<8x1024xf32>
    %cst_9 = arith.constant 0.000000e+00 : f32
    %22 = vector.broadcast %cst_9 : f32 to vector<8x1024xf32>
    %23 = arith.select %21, %19, %22 : vector<8x1024xi1>, vector<8x1024xf32>
    %24 = vector.broadcast %0 : f32 to vector<8x1024xf32>
    %25 = arith.mulf %23, %24 : vector<8x1024xf32>
    %c0_10 = arith.constant 0 : index
    %c0_11 = arith.constant 0 : index
    %26 = vector.load %arg3[%c0_10, %c0_11] : memref<8x1024xf32, #tpu.memory_space<vmem>>, vector<8x1024xf32>
    tpu.vector_store %arg3[%c0_10, %c0_11], %25 {strides = array<i32>} : memref<8x1024xf32, #tpu.memory_space<vmem>>, vector<8x1024xf32>,
    %27 = arith.subf %6, %25 : vector<8x1024xf32>
    %28 = math.absf %27 : vector<8x1024xf32>
    %29 = vector.shape_cast %28 : vector<8x1024xf32> to vector<1x8x1024xf32>
    %cst_12 = arith.constant dense<0.000000e+00> : vector<1xf32>
    %30 = vector.multi_reduction <add>, %29, %cst_12 [1, 2] : vector<1x8x1024xf32> to vector<1xf32>
    %31 = vector.shape_cast %30 : vector<1xf32> to vector<1x1x1xf32>
    %32 = vector.extract %31[0, 0, 0] : f32 from vector<1x1x1xf32>
    %33 = tpu.iota {dimensions = array<i32: 0>} : vector<8x128xi32>
    %34 = tpu.iota {dimensions = array<i32: 1>} : vector<8x128xi32>
    %c0_i32 = arith.constant 0 : i32
    %35 = vector.broadcast %c0_i32 : i32 to vector<8x128xi32>
    %36 = arith.cmpi eq, %33, %35 : vector<8x128xi32>
    %c0_i32_13 = arith.constant 0 : i32
    %37 = vector.broadcast %c0_i32_13 : i32 to vector<8x128xi32>
    %38 = arith.cmpi eq, %34, %37 : vector<8x128xi32>
    %39 = arith.andi %36, %38 : vector<8x128xi1>
    %cst_14 = arith.constant 0.000000e+00 : f32
    %40 = vector.broadcast %32 : f32 to vector<8x128xf32>
    %41 = vector.broadcast %cst_14 : f32 to vector<8x128xf32>
    %42 = arith.select %39, %40, %41 : vector<8x128xi1>, vector<8x128xf32>
    %c0_15 = arith.constant 0 : index
    %c0_16 = arith.constant 0 : index
    %43 = vector.load %arg4[%c0_15, %c0_16] : memref<8x128xf32, #tpu.memory_space<vmem>>, vector<8x128xf32>
    tpu.vector_store %arg4[%c0_15, %c0_16], %42 {strides = array<i32>} : memref<8x128xf32, #tpu.memory_space<vmem>>, vector<8x128xf32>,
    return
  }
  func.func @transform_0(%arg0: i32) -> (i32, i32) {
    %c0_i32 = arith.constant 0 : i32
    %c0_i32_0 = arith.constant 0 : i32
    %c0_i32_1 = arith.constant 0 : i32
    return %c0_i32, %c0_i32_0 : i32, i32
  }
  func.func @transform_1(%arg0: i32) -> (i32, i32) {
    %c0_i32 = arith.constant 0 : i32
    %c0_i32_0 = arith.constant 0 : i32
    return %arg0, %c0_i32 : i32, i32
  }
  func.func @transform_2(%arg0: i32) -> (i32, i32) {
    %c0_i32 = arith.constant 0 : i32
    %c0_i32_0 = arith.constant 0 : i32
    return %arg0, %c0_i32 : i32, i32
  }
  func.func @transform_3(%arg0: i32) -> (i32, i32) {
    %c0_i32 = arith.constant 0 : i32
    %c0_i32_0 = arith.constant 0 : i32
    return %arg0, %c0_i32 : i32, i32
  }
}

</mosaic_0001>

<bundles_post_ra>
// kernel: tpu_custom_call.1
= control target key start
LH: loop header
LB: loop body
LE: loop exit
PB: predicated region body
PF: predicated region fallthrough
CT: control target
= control target key end

     0   :  { %10 = vsyncpa [#allocation4], 0  ;;  %s506_s0 = inlined_call_operand.<no memory space> [shape: f32[1,1], index: 0, kind: input, shape index: {}]   ;;  %s507_s1 = inlined_call_operand.hbm [shape: f32[8,1024], index: 1, kind: input, shape index: {}]   ;;  %s508_s2 = inlined_call_operand.hbm [shape: f32[8,1024], index: 2, kind: output, shape index: {0}]   ;;  %s509_s3 = inlined_call_operand.hbm [shape: f32[8,128], index: 3, kind: output, shape index: {1}]  }
   0x1   :  { %11 = vsyncpa [#allocation5], 0 }
   0x2   :  { %12 = vsyncpa [#allocation8], 0  ;;  %s362_s12 = smov [#allocation3]   ;;  %s290_s16 = scalar_lea.hbm %s507_s1, 1024 }
   0x3   :  { %s21_s13 = sshll.u32 %s362_s12, 4  ;;  %p291_p0 = scmp.ne.s32.totalorder %s507_s1, %s290_s16  ;;  %s22_s13 = int_to_ptr.vmem [resolvable:$true] %s21_s13 }
   0x4   :  { %p294_p1 = scmp.lt.u32.totalorder %s290_s16, %s507_s1 }
   0x6   :  { %p296_p2 = pnand %p294_p1, %p291_p0 }
   0x8   :  { %299 = shalt.err (!%p296_p2)
}
   0x9   :  { %s300_s21 = scalar_lea.vmem %s22_s13, 1024  ;;  %p305_p4 = scmp.lt.s32.totalorder %s22_s13, %s22_s13 }
   0xa   :  { %p301_p3 = scmp.ne.s32.totalorder %s22_s13, %s300_s21  ;;  %p306_p5 = scmp.lt.s32.totalorder %s300_s21, %s300_s21 }
   0xc   :  { %p307_p6 = por %p306_p5, %p305_p4 }
   0xe   :  { %p308_p7 = pnand %p307_p6, %p301_p3 }
  0x10   :  { %311 = shalt.err (!%p308_p7)
}
  0x11   :  { %24 = dma.hbm_to_vmem [thread:$0]  %s507_s1, 1024, %s22_s13, [#allocation4]   ;;  %v400_v0 = vstv %s506_s0 }
  0x12   :  { %356 = dma.done.wait [#allocation4], 1024  }
  0x13   :  { %357 = vsyncadd [#allocation4], 4294966272  ;;  %256 = vrcp.f32 %v400_v0  ;;  %v32_v2 = vld [vmem:[#allocation3] sm:$0xff]  ;;  %v33_v3 = vld [vmem:[#allocation3 + $0x8] sm:$0xff]  ;;  %s363_s1 = smov [#allocation6]  }
  0x14   :  { %v34_v4 = vld [vmem:[#allocation3 + $0x10] sm:$0xff]  ;;  %v35_v5 = vld [vmem:[#allocation3 + $0x18] sm:$0xff]  ;;  %v36_v6 = vld [vmem:[#allocation3 + $0x20] sm:$0xff]  ;;  %v40_v7 = vmax.f32 %v32_v2, 0.0  ;;  %v41_v8 = vmax.f32 %v33_v3, 0.0  ;;  %s218_s26 = sshll.u32 %s363_s1, 4  ;;  %s219_s26 = int_to_ptr.vmem [resolvable:$true] %s218_s26 }
  0x15   :  { %v37_v9 = vld [vmem:[#allocation3 + $0x28] sm:$0xff]  ;;  %v42_v10 = vmax.f32 %v34_v4, 0.0  ;;  %v38_v11 = vld [vmem:[#allocation3 + $0x30] sm:$0xff]  ;;  %v43_v12 = vmax.f32 %v35_v5, 0.0  ;;  %v39_v13 = vld [vmem:[#allocation3 + $0x38] sm:$0xff]  ;;  %v44_v14 = vmax.f32 %v36_v6, 0.0  ;;  %p317_p9 = scmp.lt.s32.totalorder %s219_s26, %s219_s26 }
  0x16   :  { %v45_v15 = vmax.f32 %v37_v9, 0.0  ;;  %v404_v16 = vmin.f32 %v400_v0, %v40_v7  ;;  %v407_v17 = vmin.f32 %v400_v0, %v41_v8  ;;  %v46_v18 = vmax.f32 %v38_v11, 0.0  ;;  %s312_s27 = scalar_lea.vmem %s219_s26, 1024 }
  0x17   :  { %v410_v19 = vmin.f32 %v400_v0, %v42_v10  ;;  %v47_v20 = vmax.f32 %v39_v13, 0.0  ;;  %v413_v21 = vmin.f32 %v400_v0, %v43_v12  ;;  %v416_v22 = vmin.f32 %v400_v0, %v44_v14  ;;  %p313_p8 = scmp.ne.s32.totalorder %s219_s26, %s312_s27  ;;  %p318_p10 = scmp.lt.s32.totalorder %s312_s27, %s312_s27 }
  0x18   :  { %v419_v24 = vmin.f32 %v400_v0, %v45_v15  ;;  %v424_v27 = vmin.f32 %v400_v0, %v46_v18 }
  0x19   :  { %v428_v29 = vmin.f32 %v400_v0, %v47_v20  ;;  %p319_p11 = por %p318_p10, %p317_p9 }
  0x1b   :  { %p320_p12 = pnand %p319_p11, %p313_p8 }
  0x1d   :  { %v257_v1 = vpop.eup %256 }
  0x1e   :  { %241 = vpush %v257_v1 }
  0x4f   :  { %s242_s0 = spop %241 }
  0x50   :  { %v57_v23 = vstv %s242_s0 }
  0x51   :  { %v58_v25 = vmul.f32 %v57_v23, %v404_v16  ;;  %v59_v26 = vmul.f32 %v57_v23, %v407_v17  ;;  %v60_v28 = vmul.f32 %v57_v23, %v410_v19  ;;  %v61_v30 = vmul.f32 %v57_v23, %v413_v21 }
  0x52   :  { %v62_v31 = vmul.f32 %v57_v23, %v416_v22  ;;  %v63_v32 = vmul.f32 %v57_v23, %v419_v24  ;;  %v64_v33 = vmul.f32 %v57_v23, %v424_v27  ;;  %v65_v34 = vmul.f32 %v57_v23, %v428_v29 }
  0x53   :  { %258 = vlog2.f32 %v58_v25  ;;  %vm66_vm0 = vcmp.eq.f32.partialorder %v58_v25, 0.0  ;;  %vm67_vm1 = vcmp.eq.f32.partialorder %v59_v26, 0.0  ;;  %vm68_vm2 = vcmp.eq.f32.partialorder %v60_v28, 0.0 }
  0x54   :  { %260 = vlog2.f32 %v59_v26  ;;  %vm69_vm3 = vcmp.eq.f32.partialorder %v61_v30, 0.0  ;;  %vm70_vm4 = vcmp.eq.f32.partialorder %v62_v31, 0.0  ;;  %vm71_vm5 = vcmp.eq.f32.partialorder %v63_v32, 0.0 }
  0x55   :  { %262 = vlog2.f32 %v60_v28  ;;  %vm72_vm6 = vcmp.eq.f32.partialorder %v64_v33, 0.0  ;;  %vm73_vm7 = vcmp.eq.f32.partialorder %v65_v34, 0.0 }
  0x56   :  { %264 = vlog2.f32 %v61_v30 }
  0x57   :  { %266 = vlog2.f32 %v62_v31 }
  0x58   :  { %268 = vlog2.f32 %v63_v32 }
  0x59   :  { %270 = vlog2.f32 %v64_v33 }
  0x5a   :  { %272 = vlog2.f32 %v65_v34 }
  0x5d   :  { %v259_v35 = vpop.eup %258 }
  0x5e   :  { %v261_v36 = vpop.eup %260  ;;  %v75_v37 = vmul.f32 0.6931472, %v259_v35 }
  0x5f   :  { %v263_v38 = vpop.eup %262  ;;  %v77_v39 = vmul.f32 0.6931472, %v261_v36 }
  0x60   :  { %v265_v40 = vpop.eup %264  ;;  %v90_v41 = vmul.f32 1.442695, %v75_v37  ;;  %v79_v42 = vmul.f32 0.6931472, %v263_v38 }
  0x61   :  { %v267_v43 = vpop.eup %266  ;;  %v91_v44 = vmul.f32 1.442695, %v77_v39  ;;  %v81_v45 = vmul.f32 0.6931472, %v265_v40 }
  0x62   :  { %v269_v46 = vpop.eup %268  ;;  %v98_v47 = vsel %vm66_vm0, -6.0, %v90_v41  ;;  %v83_v48 = vmul.f32 0.6931472, %v267_v43  ;;  %v92_v49 = vmul.f32 1.442695, %v79_v42 }
  0x63   :  { %v271_v50 = vpop.eup %270  ;;  %v99_v51 = vsel %vm67_vm1, -6.0, %v91_v44  ;;  %v243_v52 = vround.rtne.f32 %v98_v47  ;;  %v85_v53 = vmul.f32 0.6931472, %v269_v46  ;;  %v93_v54 = vmul.f32 1.442695, %v81_v45 }
  0x64   :  { %v273_v55 = vpop.eup %272  ;;  %v244_v56 = vround.rtne.f32 %v99_v51  ;;  %v87_v57 = vmul.f32 0.6931472, %v271_v50  ;;  %v94_v58 = vmul.f32 1.442695, %v83_v48  ;;  %v100_v59 = vsel %vm68_vm2, -6.0, %v92_v49 }
  0x65   :  { %v114_v60 = vmul.f32 0.6931472, %v243_v52  ;;  %v89_v61 = vmul.f32 0.6931472, %v273_v55  ;;  %v95_v62 = vmul.f32 1.442695, %v85_v53  ;;  %v245_v63 = vround.rtne.f32 %v100_v59 }
  0x66   :  { %v115_v1 = vmul.f32 0.6931472, %v244_v56  ;;  %v96_v2 = vmul.f32 1.442695, %v87_v57  ;;  %v101_v3 = vsel %vm69_vm3, -6.0, %v93_v54  ;;  %v102_v4 = vsel %vm70_vm4, -6.0, %v94_v58 }
  0x67   :  { %v122_v5 = vmul.f32 1.442695, %v114_v60  ;;  %v97_v6 = vmul.f32 1.442695, %v89_v61  ;;  %v103_v7 = vsel %vm71_vm5, -6.0, %v95_v62  ;;  %v246_v8 = vround.rtne.f32 %v101_v3 }
  0x68   :  { %v124_v9 = vmul.f32 1.442695, %v115_v1  ;;  %v104_v10 = vsel %vm72_vm6, -6.0, %v96_v2  ;;  %v247_v11 = vround.rtne.f32 %v102_v4  ;;  %v248_v12 = vround.rtne.f32 %v103_v7 }
  0x69   :  { %274 = vpow2.f32 %v122_v5  ;;  %v105_v13 = vsel %vm73_vm7, -6.0, %v97_v6  ;;  %v249_v14 = vround.rtne.f32 %v104_v10  ;;  %v116_v15 = vmul.f32 0.6931472, %v245_v63 }
  0x6a   :  { %276 = vpow2.f32 %v124_v9  ;;  %v250_v18 = vround.rtne.f32 %v105_v13  ;;  %v117_v20 = vmul.f32 0.6931472, %v246_v8  ;;  %v118_v23 = vmul.f32 0.6931472, %v247_v11 }
  0x6b   :  { %v119_v25 = vmul.f32 0.6931472, %v248_v12  ;;  %v120_v26 = vmul.f32 0.6931472, %v249_v14  ;;  %v126_v28 = vmul.f32 1.442695, %v116_v15 }
  0x6c   :  { %v121_v30 = vmul.f32 0.6931472, %v250_v18  ;;  %v128_v31 = vmul.f32 1.442695, %v117_v20  ;;  %v130_v32 = vmul.f32 1.442695, %v118_v23 }
  0x6d   :  { %278 = vpow2.f32 %v126_v28  ;;  %v132_v33 = vmul.f32 1.442695, %v119_v25  ;;  %v134_v35 = vmul.f32 1.442695, %v120_v26  ;;  %vm138_vm8 = vcmp.gt.f32.partialorder %v243_v52, -6.0 }
  0x6e   :  { %280 = vpow2.f32 %v128_v31  ;;  %v136_v36 = vmul.f32 1.442695, %v121_v30  ;;  %vm139_vm9 = vcmp.gt.f32.partialorder %v244_v56, -6.0  ;;  %vm140_vm10 = vcmp.gt.f32.partialorder %v245_v63, -6.0 }
  0x6f   :  { %282 = vpow2.f32 %v130_v32  ;;  %vm141_vm11 = vcmp.gt.f32.partialorder %v246_v8, -6.0  ;;  %vm445_vm12 = vcmp.gt.f32.partialorder %v247_v11, -6.0  ;;  %vm450_vm13 = vcmp.gt.f32.partialorder %v248_v12, -6.0 }
  0x70   :  { %284 = vpow2.f32 %v132_v33  ;;  %vm455_vm14 = vcmp.gt.f32.partialorder %v249_v14, -6.0  ;;  %vm462_vm15 = vcmp.gt.f32.partialorder %v250_v18, -6.0 }
  0x71   :  { %286 = vpow2.f32 %v134_v35 }
  0x72   :  { %288 = vpow2.f32 %v136_v36 }
  0x73   :  { %v275_v34 = vpop.eup %274 }
  0x74   :  { %v277_v37 = vpop.eup %276  ;;  %v146_v38 = vsel %vm138_vm8, %v275_v34, 0.0 }
  0x75   :  { %v147_v39 = vsel %vm139_vm9, %v277_v37, 0.0  ;;  %v154_v40 = vmul.f32 %v146_v38, %v400_v0 }
  0x76   :  { %v155_v41 = vmul.f32 %v147_v39, %v400_v0 }
  0x77   :  { %v279_v42 = vpop.eup %278  ;;  %162 = vst [vmem:[#allocation6] sm:$0xff] %v154_v40  ;;  %v170_v43 = vsub.f32 %v404_v16, %v154_v40 }
  0x78   :  { %v281_v44 = vpop.eup %280  ;;  %v148_v46 = vsel %vm140_vm10, %v279_v42, 0.0  ;;  %163 = vst [vmem:[#allocation6 + $0x8] sm:$0xff] %v155_v41  ;;  %v171_v47 = vsub.f32 %v407_v17, %v155_v41 }
  0x79   :  { %v283_v48 = vpop.eup %282  ;;  %v149_v50 = vsel %vm141_vm11, %v281_v44, 0.0  ;;  %v156_v51 = vmul.f32 %v148_v46, %v400_v0  ;;  %v178_v52 = vand.u32 2147483647, %v170_v43 }
  0x7a   :  { %v285_v16 = vpop.eup %284  ;;  %v150_v54 = vsel %vm445_vm12, %v283_v48, 0.0  ;;  %v157_v55 = vmul.f32 %v149_v50, %v400_v0  ;;  %v179_v17 = vand.u32 2147483647, %v171_v47 }
  0x7b   :  { %v287_v56 = vpop.eup %286  ;;  %v151_v58 = vsel %vm450_vm13, %v285_v16, 0.0  ;;  %v158_v59 = vmul.f32 %v150_v54, %v400_v0  ;;  %164 = vst [vmem:[#allocation6 + $0x10] sm:$0xff] %v156_v51  ;;  %v172_v60 = vsub.f32 %v410_v19, %v156_v51 }
  0x7c   :  { %v289_v61 = vpop.eup %288  ;;  %v152_v62 = vsel %vm455_vm14, %v287_v56, 0.0  ;;  %v159_v63 = vmul.f32 %v151_v58, %v400_v0  ;;  %165 = vst [vmem:[#allocation6 + $0x18] sm:$0xff] %v157_v55  ;;  %v173_v1 = vsub.f32 %v413_v21, %v157_v55  ;;  %v186_v2 = vadd.f32 %v179_v17, %v178_v52 }
  0x7d   :  { %v153_v3 = vsel %vm462_vm15, %v289_v61, 0.0  ;;  %v160_v4 = vmul.f32 %v152_v62, %v400_v0  ;;  %166 = vst [vmem:[#allocation6 + $0x20] sm:$0xff] %v158_v59  ;;  %v174_v5 = vsub.f32 %v416_v22, %v158_v59  ;;  %v180_v6 = vand.u32 2147483647, %v172_v60 }
  0x7e   :  { %v161_v19 = vmul.f32 %v153_v3, %v400_v0  ;;  %167 = vst [vmem:[#allocation6 + $0x28] sm:$0xff] %v159_v63  ;;  %v175_v7 = vsub.f32 %v419_v24, %v159_v63  ;;  %v181_v8 = vand.u32 2147483647, %v173_v1 }
  0x7f   :  { %168 = vst [vmem:[#allocation6 + $0x30] sm:$0xff] %v160_v4  ;;  %v187_v9 = vadd.f32 %v186_v2, %v180_v6  ;;  %v176_v21 = vsub.f32 %v424_v27, %v160_v4  ;;  %v182_v10 = vand.u32 2147483647, %v174_v5 }
  0x80   :  { %169 = vst [vmem:[#allocation6 + $0x38] sm:$0xff] %v161_v19  ;;  %v177_v12 = vsub.f32 %v428_v29, %v161_v19  ;;  %v183_v13 = vand.u32 2147483647, %v175_v7 }
  0x81   :  { %v188_v11 = vadd.f32 %v187_v9, %v181_v8  ;;  %v184_v15 = vand.u32 2147483647, %v176_v21 }
  0x82   :  { %v185_v18 = vand.u32 2147483647, %v177_v12 }
  0x83   :  { %v189_v14 = vadd.f32 %v188_v11, %v182_v10 }
  0x85   :  { %v190_v22 = vadd.f32 %v189_v14, %v183_v13 }
  0x87   :  { %v191_v20 = vadd.f32 %v190_v22, %v184_v15 }
  0x89   :  { %v192_v0 = vadd.f32 %v191_v20, %v185_v18 }
  0x8b   :  { %193 = vadd.xlane.f32.xlu0 %v192_v0 }
  0x8c   :  { %323 = shalt.err (!%p320_p12)
}
  0x8d   :  { %s324_s30 = scalar_lea.hbm %s508_s2, 1024 }
  0x8e   :  { %p325_p13 = scmp.ne.s32.totalorder %s508_s2, %s324_s30  ;;  %p328_p0 = scmp.lt.u32.totalorder %s324_s30, %s508_s2 }
  0x90   :  { %p330_p1 = pnand %p328_p0, %p325_p13 }
  0x92   :  { %333 = shalt.err (!%p330_p1)
}
  0x93   :  { %221 = dma.vmem_to_hbm [thread:$0]  %s219_s26, 1024, %s508_s2, [#allocation5]   ;;  %v202_v30 = vlaneseq }
  0x94   :  { %s364_s10 = smov [#allocation7]  }
  0x95   :  { %v203_v31 = vshrl.u32 %v202_v30, 7  ;;  %v205_v32 = vand.u32 127, %v202_v30  ;;  %s228_s11 = sshll.u32 %s364_s10, 4  ;;  %s229_s11 = int_to_ptr.vmem [resolvable:$true] %s228_s11 }
  0x96   :  { %s334_s2 = scalar_lea.vmem %s229_s11, 128  ;;  %p339_p3 = scmp.lt.s32.totalorder %s229_s11, %s229_s11 }
  0x97   :  { %vm206_vm0 = vcmp.eq.s32.totalorder %v203_v31, 0  ;;  %vm207_vm1 = vcmp.eq.s32.totalorder %v205_v32, 0  ;;  %p335_p2 = scmp.ne.s32.totalorder %s229_s11, %s334_s2  ;;  %p340_p4 = scmp.lt.s32.totalorder %s334_s2, %s334_s2 }
  0x98   :  { %vm208_vm2 = vmand %vm206_vm0, %vm207_vm1 }
  0x99   :  { %p341_p5 = por %p340_p4, %p339_p3 }
  0x9b   :  { %p342_p6 = pnand %p341_p5, %p335_p2 }
 0x118   :  { %v194_v24 = vpop.xlane.xlu0 %193 }
 0x119   :  { %v195_v27 = vrot.slane %v194_v24, 4 }
 0x11b   :  { %v196_v29 = vadd.f32 %v195_v27, %v194_v24 }
 0x11d   :  { %v197_v23 = vrot.slane %v196_v29, 2 }
 0x11f   :  { %v198_v25 = vadd.f32 %v197_v23, %v196_v29 }
 0x121   :  { %v199_v26 = vrot.slane %v198_v25, 1 }
 0x123   :  { %v200_v28 = vadd.f32 %v199_v26, %v198_v25 }
 0x125   :  { %251 = vpush %v200_v28 }
 0x156   :  { %s252_s12 = spop %251 }
 0x157   :  { %v209_v33 = vstv %s252_s12 }
 0x158   :  { %v210_v35 = vsel %vm208_vm2, %v209_v33, 0.0 }
 0x159   :  { %211 = vst [vmem:[#allocation7] sm:$0xff] %v210_v35 }
 0x15a   :  { %345 = shalt.err (!%p342_p6)
}
 0x15b   :  { %s346_s15 = scalar_lea.hbm %s509_s3, 128 }
 0x15c   :  { %p347_p7 = scmp.ne.s32.totalorder %s509_s3, %s346_s15  ;;  %p350_p8 = scmp.lt.u32.totalorder %s346_s15, %s509_s3 }
 0x15e   :  { %p352_p9 = pnand %p350_p8, %p347_p7 }
 0x160   :  { %355 = shalt.err (!%p352_p9)
}
 0x161   :  { %231 = dma.vmem_to_hbm [thread:$0]  %s229_s11, 128, %s509_s3, [#allocation8]  }
 0x162   :  { %358 = dma.done.wait [#allocation5], 1024  }
 0x163   :  { %359 = vsyncadd [#allocation5], 4294966272 }
 0x164   :  { %360 = dma.done.wait [#allocation8], 128  }
 0x165   :  { %361 = vsyncadd [#allocation8], 4294967168 }
 0x166   :  { %238 = vsyncpa [#allocation4], 1 }
 0x167   :  { %239 = vsyncpa [#allocation5], 1 }
 0x168   :  { %240 = vsyncpa [#allocation8], 1 }

</bundles_post_ra>
